<compile_context>
chip_gen: v5e
topology: v5e:2x2
jax: 0.10.0
libtpu: 0.0.40
codegen_flags: <defaults>
</compile_context>

<pallas_src>
import functools

import jax
import jax.numpy as jnp
from jax.experimental import pallas as pl
from jax.experimental.pallas import tpu as pltpu

EPS = 1e-5    # PyTorch LayerNorm default
LANE = 128    # TPU lane width


def _round_up(n, m):
    return ((n + m - 1) // m) * m


def _cdiv(a, b):
    return -(-a // b)


def _vmem_capacity_bytes():
    """Physical per-core VMEM (128 MiB on v5e/v6e, 64 MiB per TC on v7x)."""
    try:
        info = pltpu.get_tpu_info()
        cap = int(getattr(info, "vmem_capacity_bytes", 0) or 0)
        if cap > 0:
            return cap
    except Exception:
        pass
    return 64 * 1024 * 1024   # conservative default (v7x per-TensorCore)


def _layernorm(x, gamma, beta, true_f):
    """LayerNorm over the last axis with `true_f` real features.

    `x` may carry zero-padded trailing columns (padded width = x.shape[-1]):
      * unpadded  -> exact centered two-pass (best precision after Linear+bias)
      * padded    -> one-pass E[x^2] - E[x]^2, which is exact under zero column
                     padding (padded columns contribute 0 to both sums), with a
                     clamp so f32 rounding can never produce a negative var.
    gamma/beta are zero in padded columns so padded outputs stay exactly 0.
    """
    padded_f = x.shape[-1]
    inv_f = 1.0 / float(true_f)
    mean = jnp.sum(x, axis=-1, keepdims=True) * inv_f
    if padded_f == true_f:
        c = x - mean
        var = jnp.sum(c * c, axis=-1, keepdims=True) * inv_f
        xn = c * jax.lax.rsqrt(var + EPS)
    else:
        msq = jnp.sum(x * x, axis=-1, keepdims=True) * inv_f
        var = jnp.maximum(msq - mean * mean, 0.0)
        xn = (x - mean) * jax.lax.rsqrt(var + EPS)
    return xn * gamma + beta


def _resident_spec():
    # Whole-array, single-copy VMEM residency (no pipeline double-buffer).
    return pl.BlockSpec(memory_space=pltpu.MemorySpace.VMEM)


# ----------------------------------------------------------------------------
# Main fused kernel (all weights VMEM-resident, batch-streamed activations)
# ----------------------------------------------------------------------------
def residual_layer_kernel(
    x_ref,
    ln1_g_ref, ln1_b_ref,       # LayerNorm(in_sz)
    w1_ref, b1_ref,             # fc1: (in_p, out_p) mm_dtype, (1, out_p) f32
    ln2_g_ref, ln2_b_ref,       # LayerNorm(out_sz)
    w2_ref, b2_ref,             # fc2
    wd_ref, bd_ref,             # downsample Linear
    lnd_g_ref, lnd_b_ref,       # downsample LayerNorm(out_sz)
    out_ref,
    *, in_f, out_f,
):
    mm_dtype = w1_ref.dtype
    x_mm = x_ref[...]                       # streamed in mm_dtype (bf16)
    x = x_mm.astype(jnp.float32)

    # main branch: LN -> (dropout = identity in eval) -> ReLU -> fc1
    #              -> LN -> (dropout) -> ReLU -> fc2
    h = _layernorm(x, ln1_g_ref[...], ln1_b_ref[...], in_f)
    h = jnp.maximum(h, 0.0)
    h = jnp.dot(h.astype(mm_dtype), w1_ref[...],
                preferred_element_type=jnp.float32) + b1_ref[...]
    h = _layernorm(h, ln2_g_ref[...], ln2_b_ref[...], out_f)
    h = jnp.maximum(h, 0.0)
    h = jnp.dot(h.astype(mm_dtype), w2_ref[...],
                preferred_element_type=jnp.float32) + b2_ref[...]

    # downsample branch: Linear(in_sz, out_sz) -> LayerNorm(out_sz)
    sd = jnp.dot(x_mm.astype(mm_dtype), wd_ref[...],
                 preferred_element_type=jnp.float32) + bd_ref[...]
    sd = _layernorm(sd, lnd_g_ref[...], lnd_b_ref[...], out_f)

    out_ref[...] = (h + sd).astype(out_ref.dtype)


# ----------------------------------------------------------------------------
# Fallback kernels (weights too large for VMEM residency -> feature tiling)
# ----------------------------------------------------------------------------
def _fb_a_kernel(x_ref, ln1_g_ref, ln1_b_ref, w1_ref, b1_ref, wd_ref, bd_ref,
                 h1_ref, sd_ref, *, in_f):
    """h1[:, j_tile] = ReLU(LN1(x)) @ w1[:, j_tile] + b1[j_tile]
       sd[:, j_tile] = x @ wd[:, j_tile] + bd[j_tile]"""
    mm = w1_ref.dtype
    x_mm = x_ref[...]
    x = x_mm.astype(jnp.float32)
    xl = jnp.maximum(_layernorm(x, ln1_g_ref[...], ln1_b_ref[...], in_f), 0.0)
    h1_ref[...] = (jnp.dot(xl.astype(mm), w1_ref[...],
                           preferred_element_type=jnp.float32)
                   + b1_ref[...]).astype(h1_ref.dtype)
    sd_ref[...] = (jnp.dot(x_mm.astype(mm), wd_ref[...],
                           preferred_element_type=jnp.float32)
                   + bd_ref[...]).astype(sd_ref.dtype)


def _fb_b_kernel(h1_ref, m2_ref, r2_ref, ln2_g_ref, ln2_b_ref,
                 w2_ref, b2_ref, sd_ref, md_ref, rd_ref,
                 lnd_g_ref, lnd_b_ref, out_ref, acc_ref):
    """out[:, j] = sum_k ReLU(LN2(h1)[:, k]) @ w2[k, j] + b2[j] + LN_d(sd)[:, j]
       LN2 / LN_d are applied from precomputed per-row (mean, rstd)."""
    k = pl.program_id(2)

    @pl.when(k == 0)
    def _():
        acc_ref[...] = jnp.zeros_like(acc_ref)

    h = (h1_ref[...] - m2_ref[...]) * r2_ref[...] * ln2_g_ref[...] + ln2_b_ref[...]
    h = jnp.maximum(h, 0.0)
    acc_ref[...] += jnp.dot(h.astype(w2_ref.dtype), w2_ref[...],
                            preferred_element_type=jnp.float32)

    @pl.when(k == pl.num_programs(2) - 1)
    def _():
        sdn = (sd_ref[...] - md_ref[...]) * rd_ref[...] * lnd_g_ref[...] \
            + lnd_b_ref[...]
        out_ref[...] = (acc_ref[...] + b2_ref[...] + sdn).astype(out_ref.dtype)


def _fallback_forward(x_p, pp, *, in_f, out_f, in_p, out_p, tile_b, b_p,
                      mm_dtype, out_dtype, vmem_cap):
    f32 = jnp.float32
    itm = jnp.dtype(mm_dtype).itemsize
    nb = b_p // tile_b

    # Column-tile width for the streamed w1/wd slabs (2 streams x 2 buffers).
    tn_a = 128
    for c in (512, 256, 128):
        if out_p % c == 0 and 4 * in_p * c * itm <= vmem_cap // 3:
            tn_a = c
            break

    h1, sd = pl.pallas_call(
        functools.partial(_fb_a_kernel, in_f=in_f),
        out_shape=(jax.ShapeDtypeStruct((b_p, out_p), f32),
                   jax.ShapeDtypeStruct((b_p, out_p), f32)),
        grid=(nb, out_p // tn_a),
        in_specs=[
            pl.BlockSpec((tile_b, in_p), lambda i, j: (i, 0)),   # x (resident over j)
            _resident_spec(), _resident_spec(),                  # ln1 gamma/beta
            pl.BlockSpec((in_p, tn_a), lambda i, j: (0, j)),     # w1 column slab
            pl.BlockSpec((1, tn_a), lambda i, j: (0, j)),        # b1
            pl.BlockSpec((in_p, tn_a), lambda i, j: (0, j)),     # wd column slab
            pl.BlockSpec((1, tn_a), lambda i, j: (0, j)),        # bd
        ],
        out_specs=(pl.BlockSpec((tile_b, tn_a), lambda i, j: (i, j)),
                   pl.BlockSpec((tile_b, tn_a), lambda i, j: (i, j))),
        compiler_params=pltpu.CompilerParams(
            dimension_semantics=("parallel", "parallel"),
            vmem_limit_bytes=int(0.8 * vmem_cap)),
    )(x_p, pp["ln1_g"], pp["ln1_b"], pp["w1"], pp["b1"], pp["wd"], pp["bd"])

    # Per-row LayerNorm statistics over the TRUE feature width (tiny jnp
    # reductions between the two pallas calls).
    def _stats(v):
        vt = v[:, :out_f]
        m = jnp.mean(vt, axis=-1, keepdims=True)
        var = jnp.mean(jnp.square(vt - m), axis=-1, keepdims=True)
        return m, jax.lax.rsqrt(var + EPS)

    m2, r2 = _stats(h1)
    md, rd = _stats(sd)

    # Feature tile for the fc2 contraction / output columns.
    tf = 128
    for c in (512, 256, 128):
        if out_p % c == 0:
            tf = c
            break

    out = pl.pallas_call(
        _fb_b_kernel,
        out_shape=jax.ShapeDtypeStruct((b_p, out_p), out_dtype),
        grid=(nb, out_p // tf, out_p // tf),
        in_specs=[
            pl.BlockSpec((tile_b, tf), lambda i, j, k: (i, k)),   # h1 (K slab)
            pl.BlockSpec((tile_b, 1), lambda i, j, k: (i, 0)),    # mean2
            pl.BlockSpec((tile_b, 1), lambda i, j, k: (i, 0)),    # rstd2
            pl.BlockSpec((1, tf), lambda i, j, k: (0, k)),        # ln2 gamma
            pl.BlockSpec((1, tf), lambda i, j, k: (0, k)),        # ln2 beta
            pl.BlockSpec((tf, tf), lambda i, j, k: (k, j)),       # w2 tile
            pl.BlockSpec((1, tf), lambda i, j, k: (0, j)),        # fc2 bias
            pl.BlockSpec((tile_b, tf), lambda i, j, k: (i, j)),   # sd tile
            pl.BlockSpec((tile_b, 1), lambda i, j, k: (i, 0)),    # mean_d
            pl.BlockSpec((tile_b, 1), lambda i, j, k: (i, 0)),    # rstd_d
            pl.BlockSpec((1, tf), lambda i, j, k: (0, j)),        # lnd gamma
            pl.BlockSpec((1, tf), lambda i, j, k: (0, j)),        # lnd beta
        ],
        out_specs=pl.BlockSpec((tile_b, tf), lambda i, j, k: (i, j)),
        scratch_shapes=[pltpu.VMEM((tile_b, tf), jnp.float32)],
        compiler_params=pltpu.CompilerParams(
            dimension_semantics=("parallel", "parallel", "arbitrary"),
            vmem_limit_bytes=int(0.8 * vmem_cap)),
    )(h1, m2, r2, pp["ln2_g"], pp["ln2_b"], pp["w2"], pp["b2"],
      sd, md, rd, pp["lnd_g"], pp["lnd_b"])

    return out


# ----------------------------------------------------------------------------
# Wrapper
# ----------------------------------------------------------------------------
def residual_layer_1d_v4(x, params, *, tile_b=512, mm_dtype=jnp.bfloat16,
                         force_fallback=False):
    """x: (B, in_sz). params: dict of jnp arrays (see init_params).

    Feature dims are padded to 128-aligned widths (lane-dense loads/stores);
    matmul operands run in `mm_dtype` (bf16) with f32 accumulation; LayerNorm
    math is f32.  Output is returned in x.dtype, sliced to (B, out_sz).
    """
    B, in_sz = x.shape
    out_sz = params["w1"].shape[1]

    f32 = jnp.float32
    out_dtype = x.dtype
    itm = jnp.dtype(mm_dtype).itemsize
    x_item = itm                               # x streamed in mm_dtype
    out_item = jnp.dtype(out_dtype).itemsize

    in_p = _round_up(in_sz, LANE)
    out_p = _round_up(out_sz, LANE)
    # NOTE: on v6e/v7x (256-wide MXU) an odd multiple of 128 could be padded to
    # a multiple of 256 when matmul-bound; kept at 128 here (v5e-optimal, less
    # weight VMEM).

    vmem_cap = _vmem_capacity_bytes()

    # ---- batch tiling: fit the activation double-buffers in ~1/4 of VMEM,
    #      keep >=2 grid steps when possible (v7x megacore), and size the tile
    #      to divide the 8-rounded batch (minimal padded-row waste). ----
    b8 = _round_up(max(B, 1), 8)
    act_budget = vmem_cap // 4
    per_row = 2 * (in_p * x_item + out_p * out_item)   # double-buffered x + out
    user_tb = max(8, (int(tile_b) // 8) * 8)
    fit_tb = max(8, ((act_budget // per_row) // 8) * 8)
    tb_cap = min(user_tb, fit_tb)
    nt = _cdiv(b8, tb_cap)
    if b8 >= 16:
        nt = max(nt, 2)                        # shard batch across 2 TCs (v7x)
    tile_b_eff = _round_up(_cdiv(b8, nt), 8)
    b_p = nt * tile_b_eff

    # ---- padded / pre-cast operands (weights cast to mm_dtype once here) ----
    def pad2(a, rows, cols, dtype):
        a = jnp.asarray(a, dtype)
        return jnp.pad(a, ((0, rows - a.shape[0]), (0, cols - a.shape[1])))

    x_p = pad2(x, b_p, in_p, mm_dtype)
    pp = {
        "ln1_g": pad2(params["ln1_g"], 1, in_p, f32),
        "ln1_b": pad2(params["ln1_b"], 1, in_p, f32),
        "w1": pad2(params["w1"], in_p, out_p, mm_dtype),
        "b1": pad2(params["b1"], 1, out_p, f32),
        "ln2_g": pad2(params["ln2_g"], 1, out_p, f32),
        "ln2_b": pad2(params["ln2_b"], 1, out_p, f32),
        "w2": pad2(params["w2"], out_p, out_p, mm_dtype),
        "b2": pad2(params["b2"], 1, out_p, f32),
        "wd": pad2(params["wd"], in_p, out_p, mm_dtype),
        "bd": pad2(params["bd"], 1, out_p, f32),
        "lnd_g": pad2(params["lnd_g"], 1, out_p, f32),
        "lnd_b": pad2(params["lnd_b"], 1, out_p, f32),
    }

    # ---- VMEM accounting (single-copy resident weights + double-buffered
    #      activation tiles + headroom) and main-vs-fallback decision ----
    weight_bytes = (2 * in_p * out_p + out_p * out_p) * itm
    param_bytes = (2 * in_p + 6 * out_p) * 4
    act_bytes = 2 * tile_b_eff * (in_p * x_item + out_p * out_item)
    main_vmem = weight_bytes + param_bytes + act_bytes + (4 << 20)

    if force_fallback or main_vmem > int(0.85 * vmem_cap):
        y_p = _fallback_forward(
            x_p, pp, in_f=in_sz, out_f=out_sz, in_p=in_p, out_p=out_p,
            tile_b=tile_b_eff, b_p=b_p, mm_dtype=mm_dtype,
            out_dtype=out_dtype, vmem_cap=vmem_cap)
        return y_p[:B, :out_sz]

    # ---- main fused path ----
    param_order = ("ln1_g", "ln1_b", "w1", "b1", "ln2_g", "ln2_b",
                   "w2", "b2", "wd", "bd", "lnd_g", "lnd_b")
    args = (x_p,) + tuple(pp[k] for k in param_order)

    x_spec = pl.BlockSpec((tile_b_eff, in_p), lambda i: (i, 0))
    out_spec = pl.BlockSpec((tile_b_eff, out_p), lambda i: (i, 0))
    in_specs = [x_spec] + [_resident_spec() for _ in param_order]

    mm_flops = 2 * b_p * (2 * in_p * out_p + out_p * out_p)
    bytes_accessed = (b_p * in_p * x_item + b_p * out_p * out_item
                      + weight_bytes + param_bytes)

    kernel = functools.partial(residual_layer_kernel, in_f=in_sz, out_f=out_sz)

    y_p = pl.pallas_call(
        kernel,
        out_shape=jax.ShapeDtypeStruct((b_p, out_p), out_dtype),
        grid=(nt,),
        in_specs=in_specs,
        out_specs=out_spec,
        compiler_params=pltpu.CompilerParams(
            dimension_semantics=("parallel",),
            vmem_limit_bytes=int(main_vmem),
        ),
        cost_estimate=pl.CostEstimate(
            flops=int(mm_flops),
            transcendentals=int(3 * b_p),
            bytes_accessed=int(bytes_accessed),
        ),
    )(*args)

    return y_p[:B, :out_sz]


# ----------------------------------------------------------------------------
# Parameters / reference
# ----------------------------------------------------------------------------
def init_params(key, in_sz, out_sz, dtype=jnp.float32):
    """Deterministic synthetic parameters. Linear weights stored as (in, out)
    (already transposed relative to PyTorch's (out, in))."""
    ks = jax.random.split(key, 3)

    def linear(k, fan_in, fan_out):
        kw, kb = jax.random.split(k)
        bound = 1.0 / jnp.sqrt(fan_in)
        w = jax.random.uniform(kw, (fan_in, fan_out), dtype, -bound, bound)
        b = jax.random.uniform(kb, (1, fan_out), dtype, -bound, bound)
        return w, b

    w1, b1 = linear(ks[0], in_sz, out_sz)
    w2, b2 = linear(ks[1], out_sz, out_sz)
    wd, bd = linear(ks[2], in_sz, out_sz)
    return {
        "ln1_g": jnp.ones((1, in_sz), dtype),  "ln1_b": jnp.zeros((1, in_sz), dtype),
        "w1": w1, "b1": b1,
        "ln2_g": jnp.ones((1, out_sz), dtype), "ln2_b": jnp.zeros((1, out_sz), dtype),
        "w2": w2, "b2": b2,
        "wd": wd, "bd": bd,
        "lnd_g": jnp.ones((1, out_sz), dtype), "lnd_b": jnp.zeros((1, out_sz), dtype),
    }


def _reference(x, p):
    # Pure f32 reference matching the PyTorch module in eval mode.
    def ln(v, g, b):
        m = jnp.mean(v, axis=-1, keepdims=True)
        c = v - m
        var = jnp.mean(c * c, axis=-1, keepdims=True)
        return c * jax.lax.rsqrt(var + EPS) * g + b

    s = x
    h = ln(x, p["ln1_g"], p["ln1_b"])
    h = jnp.maximum(h, 0.0)
    h = h @ p["w1"] + p["b1"]
    h = ln(h, p["ln2_g"], p["ln2_b"])
    h = jnp.maximum(h, 0.0)
    h = h @ p["w2"] + p["b2"]
    s = ln(s @ p["wd"] + p["bd"], p["lnd_g"], p["lnd_b"])
    return h + s


if __name__ == "__main__":
    key = jax.random.PRNGKey(0)
    k_x, k_p = jax.random.split(key)

    batch, in_sz, out_sz = 8, 32, 64
    x = jax.random.normal(k_x, (batch, in_sz), jnp.float32)
    params = init_params(k_p, in_sz, out_sz)
    y_ref = _reference(x, params)

    # Main fused path (weights VMEM-resident).
    y = jax.block_until_ready(residual_layer_1d_v4(x, params))
    assert y.shape == (batch, out_sz)
    # bf16 matmul operands / bf16-streamed x (f32 accumulation) => modest tol.
    assert jnp.allclose(y, y_ref, atol=5e-2, rtol=5e-2), \
        float(jnp.max(jnp.abs(y - y_ref)))

    # Feature-tiled fallback path (used for large weights, e.g. 4k+ on v7x);
    # exercised here explicitly at small shapes for correctness.
    y_fb = jax.block_until_ready(
        residual_layer_1d_v4(x, params, force_fallback=True))
    assert y_fb.shape == (batch, out_sz)
    assert jnp.allclose(y_fb, y_ref, atol=5e-2, rtol=5e-2), \
        float(jnp.max(jnp.abs(y_fb - y_ref)))

    print("KERNEL_OK")
</pallas_src>

<mosaic_0001>
module attributes {stable_mosaic.version = 11 : i64} {
  func.func @residual_layer_kernel(%arg0: i32, %arg1: memref<8x128xbf16, #tpu.memory_space<vmem>>, %arg2: memref<1x128xf32, #tpu.memory_space<vmem>>, %arg3: memref<1x128xf32, #tpu.memory_space<vmem>>, %arg4: memref<128x128xbf16, #tpu.memory_space<vmem>>, %arg5: memref<1x128xf32, #tpu.memory_space<vmem>>, %arg6: memref<1x128xf32, #tpu.memory_space<vmem>>, %arg7: memref<1x128xf32, #tpu.memory_space<vmem>>, %arg8: memref<128x128xbf16, #tpu.memory_space<vmem>>, %arg9: memref<1x128xf32, #tpu.memory_space<vmem>>, %arg10: memref<128x128xbf16, #tpu.memory_space<vmem>>, %arg11: memref<1x128xf32, #tpu.memory_space<vmem>>, %arg12: memref<1x128xf32, #tpu.memory_space<vmem>>, %arg13: memref<1x128xf32, #tpu.memory_space<vmem>>, %arg14: memref<8x128xf32, #tpu.memory_space<vmem>>) attributes {dimension_semantics = [#tpu.dimension_semantics<parallel>], iteration_bounds = array<i64: 1>, scalar_prefetch = 0 : i64, scratch_operands = 0 : i64, tpu.core_type = #tpu.core_type<tc>, window_params = [{transform_indices = @transform_0, window_bounds = array<i64: 8, 128>}, {pipeline_mode = #tpu.pipeline_mode<synchronous>, transform_indices = @transform_1, window_bounds = array<i64: 1, 128>}, {pipeline_mode = #tpu.pipeline_mode<synchronous>, transform_indices = @transform_2, window_bounds = array<i64: 1, 128>}, {pipeline_mode = #tpu.pipeline_mode<synchronous>, transform_indices = @transform_3, window_bounds = array<i64: 128, 128>}, {pipeline_mode = #tpu.pipeline_mode<synchronous>, transform_indices = @transform_4, window_bounds = array<i64: 1, 128>}, {pipeline_mode = #tpu.pipeline_mode<synchronous>, transform_indices = @transform_5, window_bounds = array<i64: 1, 128>}, {pipeline_mode = #tpu.pipeline_mode<synchronous>, transform_indices = @transform_6, window_bounds = array<i64: 1, 128>}, {pipeline_mode = #tpu.pipeline_mode<synchronous>, transform_indices = @transform_7, window_bounds = array<i64: 128, 128>}, {pipeline_mode = #tpu.pipeline_mode<synchronous>, transform_indices = @transform_8, window_bounds = array<i64: 1, 128>}, {pipeline_mode = #tpu.pipeline_mode<synchronous>, transform_indices = @transform_9, window_bounds = array<i64: 128, 128>}, {pipeline_mode = #tpu.pipeline_mode<synchronous>, transform_indices = @transform_10, window_bounds = array<i64: 1, 128>}, {pipeline_mode = #tpu.pipeline_mode<synchronous>, transform_indices = @transform_11, window_bounds = array<i64: 1, 128>}, {pipeline_mode = #tpu.pipeline_mode<synchronous>, transform_indices = @transform_12, window_bounds = array<i64: 1, 128>}, {transform_indices = @transform_13, window_bounds = array<i64: 8, 128>}]} {
    %c0 = arith.constant 0 : index
    %c0_0 = arith.constant 0 : index
    %0 = vector.load %arg1[%c0, %c0_0] : memref<8x128xbf16, #tpu.memory_space<vmem>>, vector<8x128xbf16>
    %1 = arith.extf %0 : vector<8x128xbf16> to vector<8x128xf32>
    %c0_1 = arith.constant 0 : index
    %c0_2 = arith.constant 0 : index
    %2 = vector.load %arg2[%c0_1, %c0_2] : memref<1x128xf32, #tpu.memory_space<vmem>>, vector<1x128xf32>
    %c0_3 = arith.constant 0 : index
    %c0_4 = arith.constant 0 : index
    %3 = vector.load %arg3[%c0_3, %c0_4] : memref<1x128xf32, #tpu.memory_space<vmem>>, vector<1x128xf32>
    %cst = arith.constant dense<0.000000e+00> : vector<8xf32>
    %4 = vector.multi_reduction <add>, %1, %cst [1] : vector<8x128xf32> to vector<8xf32>
    %5 = vector.shape_cast %4 : vector<8xf32> to vector<8x1xf32>
    %cst_5 = arith.constant 3.125000e-02 : f32
    %6 = vector.broadcast %cst_5 : f32 to vector<8x1xf32>
    %7 = arith.mulf %5, %6 : vector<8x1xf32>
    %8 = arith.mulf %1, %1 : vector<8x128xf32>
    %cst_6 = arith.constant dense<0.000000e+00> : vector<8xf32>
    %9 = vector.multi_reduction <add>, %8, %cst_6 [1] : vector<8x128xf32> to vector<8xf32>
    %10 = vector.shape_cast %9 : vector<8xf32> to vector<8x1xf32>
    %cst_7 = arith.constant 3.125000e-02 : f32
    %11 = vector.broadcast %cst_7 : f32 to vector<8x1xf32>
    %12 = arith.mulf %10, %11 : vector<8x1xf32>
    %13 = arith.mulf %7, %7 : vector<8x1xf32>
    %14 = arith.subf %12, %13 : vector<8x1xf32>
    %cst_8 = arith.constant 0.000000e+00 : f32
    %15 = vector.broadcast %cst_8 : f32 to vector<8x1xf32>
    %16 = arith.maximumf %14, %15 : vector<8x1xf32>
    %17 = vector.broadcast %7 : vector<8x1xf32> to vector<8x128xf32>
    %18 = arith.subf %1, %17 : vector<8x128xf32>
    %cst_9 = arith.constant 9.99999974E-6 : f32
    %19 = vector.broadcast %cst_9 : f32 to vector<8x1xf32>
    %20 = arith.addf %16, %19 : vector<8x1xf32>
    %21 = math.rsqrt %20 : vector<8x1xf32>
    %22 = vector.broadcast %21 : vector<8x1xf32> to vector<8x128xf32>
    %23 = arith.mulf %18, %22 : vector<8x128xf32>
    %24 = vector.broadcast %2 : vector<1x128xf32> to vector<8x128xf32>
    %25 = arith.mulf %23, %24 : vector<8x128xf32>
    %26 = vector.broadcast %3 : vector<1x128xf32> to vector<8x128xf32>
    %27 = arith.addf %25, %26 : vector<8x128xf32>
    %cst_10 = arith.constant 0.000000e+00 : f32
    %28 = vector.broadcast %cst_10 : f32 to vector<8x128xf32>
    %29 = arith.maximumf %27, %28 : vector<8x128xf32>
    %30 = arith.truncf %29 : vector<8x128xf32> to vector<8x128xbf16>
    %c0_11 = arith.constant 0 : index
    %c0_12 = arith.constant 0 : index
    %31 = vector.load %arg4[%c0_11, %c0_12] : memref<128x128xbf16, #tpu.memory_space<vmem>>, vector<128x128xbf16>
    %cst_13 = arith.constant dense<0.000000e+00> : vector<8x128xf32>
    %32 = tpu.matmul %30, %31, %cst_13 {dimension_numbers = #tpu.dot_dimension_numbers<[1], [0], [0], [1], [0, 0, 1, 1], [], []>} : vector<8x128xbf16>, vector<128x128xbf16>, vector<8x128xf32> -> vector<8x128xf32>
    %c0_14 = arith.constant 0 : index
    %c0_15 = arith.constant 0 : index
    %33 = vector.load %arg5[%c0_14, %c0_15] : memref<1x128xf32, #tpu.memory_space<vmem>>, vector<1x128xf32>
    %34 = vector.broadcast %33 : vector<1x128xf32> to vector<8x128xf32>
    %35 = arith.addf %32, %34 : vector<8x128xf32>
    %c0_16 = arith.constant 0 : index
    %c0_17 = arith.constant 0 : index
    %36 = vector.load %arg6[%c0_16, %c0_17] : memref<1x128xf32, #tpu.memory_space<vmem>>, vector<1x128xf32>
    %c0_18 = arith.constant 0 : index
    %c0_19 = arith.constant 0 : index
    %37 = vector.load %arg7[%c0_18, %c0_19] : memref<1x128xf32, #tpu.memory_space<vmem>>, vector<1x128xf32>
    %cst_20 = arith.constant dense<0.000000e+00> : vector<8xf32>
    %38 = vector.multi_reduction <add>, %35, %cst_20 [1] : vector<8x128xf32> to vector<8xf32>
    %39 = vector.shape_cast %38 : vector<8xf32> to vector<8x1xf32>
    %cst_21 = arith.constant 1.562500e-02 : f32
    %40 = vector.broadcast %cst_21 : f32 to vector<8x1xf32>
    %41 = arith.mulf %39, %40 : vector<8x1xf32>
    %42 = arith.mulf %35, %35 : vector<8x128xf32>
    %cst_22 = arith.constant dense<0.000000e+00> : vector<8xf32>
    %43 = vector.multi_reduction <add>, %42, %cst_22 [1] : vector<8x128xf32> to vector<8xf32>
    %44 = vector.shape_cast %43 : vector<8xf32> to vector<8x1xf32>
    %cst_23 = arith.constant 1.562500e-02 : f32
    %45 = vector.broadcast %cst_23 : f32 to vector<8x1xf32>
    %46 = arith.mulf %44, %45 : vector<8x1xf32>
    %47 = arith.mulf %41, %41 : vector<8x1xf32>
    %48 = arith.subf %46, %47 : vector<8x1xf32>
    %cst_24 = arith.constant 0.000000e+00 : f32
    %49 = vector.broadcast %cst_24 : f32 to vector<8x1xf32>
    %50 = arith.maximumf %48, %49 : vector<8x1xf32>
    %51 = vector.broadcast %41 : vector<8x1xf32> to vector<8x128xf32>
    %52 = arith.subf %35, %51 : vector<8x128xf32>
    %cst_25 = arith.constant 9.99999974E-6 : f32
    %53 = vector.broadcast %cst_25 : f32 to vector<8x1xf32>
    %54 = arith.addf %50, %53 : vector<8x1xf32>
    %55 = math.rsqrt %54 : vector<8x1xf32>
    %56 = vector.broadcast %55 : vector<8x1xf32> to vector<8x128xf32>
    %57 = arith.mulf %52, %56 : vector<8x128xf32>
    %58 = vector.broadcast %36 : vector<1x128xf32> to vector<8x128xf32>
    %59 = arith.mulf %57, %58 : vector<8x128xf32>
    %60 = vector.broadcast %37 : vector<1x128xf32> to vector<8x128xf32>
    %61 = arith.addf %59, %60 : vector<8x128xf32>
    %cst_26 = arith.constant 0.000000e+00 : f32
    %62 = vector.broadcast %cst_26 : f32 to vector<8x128xf32>
    %63 = arith.maximumf %61, %62 : vector<8x128xf32>
    %64 = arith.truncf %63 : vector<8x128xf32> to vector<8x128xbf16>
    %c0_27 = arith.constant 0 : index
    %c0_28 = arith.constant 0 : index
    %65 = vector.load %arg8[%c0_27, %c0_28] : memref<128x128xbf16, #tpu.memory_space<vmem>>, vector<128x128xbf16>
    %cst_29 = arith.constant dense<0.000000e+00> : vector<8x128xf32>
    %66 = tpu.matmul %64, %65, %cst_29 {dimension_numbers = #tpu.dot_dimension_numbers<[1], [0], [0], [1], [0, 0, 1, 1], [], []>} : vector<8x128xbf16>, vector<128x128xbf16>, vector<8x128xf32> -> vector<8x128xf32>
    %c0_30 = arith.constant 0 : index
    %c0_31 = arith.constant 0 : index
    %67 = vector.load %arg9[%c0_30, %c0_31] : memref<1x128xf32, #tpu.memory_space<vmem>>, vector<1x128xf32>
    %68 = vector.broadcast %67 : vector<1x128xf32> to vector<8x128xf32>
    %69 = arith.addf %66, %68 : vector<8x128xf32>
    %c0_32 = arith.constant 0 : index
    %c0_33 = arith.constant 0 : index
    %70 = vector.load %arg10[%c0_32, %c0_33] : memref<128x128xbf16, #tpu.memory_space<vmem>>, vector<128x128xbf16>
    %cst_34 = arith.constant dense<0.000000e+00> : vector<8x128xf32>
    %71 = tpu.matmul %0, %70, %cst_34 {dimension_numbers = #tpu.dot_dimension_numbers<[1], [0], [0], [1], [0, 0, 1, 1], [], []>} : vector<8x128xbf16>, vector<128x128xbf16>, vector<8x128xf32> -> vector<8x128xf32>
    %c0_35 = arith.constant 0 : index
    %c0_36 = arith.constant 0 : index
    %72 = vector.load %arg11[%c0_35, %c0_36] : memref<1x128xf32, #tpu.memory_space<vmem>>, vector<1x128xf32>
    %73 = vector.broadcast %72 : vector<1x128xf32> to vector<8x128xf32>
    %74 = arith.addf %71, %73 : vector<8x128xf32>
    %c0_37 = arith.constant 0 : index
    %c0_38 = arith.constant 0 : index
    %75 = vector.load %arg12[%c0_37, %c0_38] : memref<1x128xf32, #tpu.memory_space<vmem>>, vector<1x128xf32>
    %c0_39 = arith.constant 0 : index
    %c0_40 = arith.constant 0 : index
    %76 = vector.load %arg13[%c0_39, %c0_40] : memref<1x128xf32, #tpu.memory_space<vmem>>, vector<1x128xf32>
    %cst_41 = arith.constant dense<0.000000e+00> : vector<8xf32>
    %77 = vector.multi_reduction <add>, %74, %cst_41 [1] : vector<8x128xf32> to vector<8xf32>
    %78 = vector.shape_cast %77 : vector<8xf32> to vector<8x1xf32>
    %cst_42 = arith.constant 1.562500e-02 : f32
    %79 = vector.broadcast %cst_42 : f32 to vector<8x1xf32>
    %80 = arith.mulf %78, %79 : vector<8x1xf32>
    %81 = arith.mulf %74, %74 : vector<8x128xf32>
    %cst_43 = arith.constant dense<0.000000e+00> : vector<8xf32>
    %82 = vector.multi_reduction <add>, %81, %cst_43 [1] : vector<8x128xf32> to vector<8xf32>
    %83 = vector.shape_cast %82 : vector<8xf32> to vector<8x1xf32>
    %cst_44 = arith.constant 1.562500e-02 : f32
    %84 = vector.broadcast %cst_44 : f32 to vector<8x1xf32>
    %85 = arith.mulf %83, %84 : vector<8x1xf32>
    %86 = arith.mulf %80, %80 : vector<8x1xf32>
    %87 = arith.subf %85, %86 : vector<8x1xf32>
    %cst_45 = arith.constant 0.000000e+00 : f32
    %88 = vector.broadcast %cst_45 : f32 to vector<8x1xf32>
    %89 = arith.maximumf %87, %88 : vector<8x1xf32>
    %90 = vector.broadcast %80 : vector<8x1xf32> to vector<8x128xf32>
    %91 = arith.subf %74, %90 : vector<8x128xf32>
    %cst_46 = arith.constant 9.99999974E-6 : f32
    %92 = vector.broadcast %cst_46 : f32 to vector<8x1xf32>
    %93 = arith.addf %89, %92 : vector<8x1xf32>
    %94 = math.rsqrt %93 : vector<8x1xf32>
    %95 = vector.broadcast %94 : vector<8x1xf32> to vector<8x128xf32>
    %96 = arith.mulf %91, %95 : vector<8x128xf32>
    %97 = vector.broadcast %75 : vector<1x128xf32> to vector<8x128xf32>
    %98 = arith.mulf %96, %97 : vector<8x128xf32>
    %99 = vector.broadcast %76 : vector<1x128xf32> to vector<8x128xf32>
    %100 = arith.addf %98, %99 : vector<8x128xf32>
    %101 = arith.addf %69, %100 : vector<8x128xf32>
    %c0_47 = arith.constant 0 : index
    %c0_48 = arith.constant 0 : index
    %102 = vector.load %arg14[%c0_47, %c0_48] : memref<8x128xf32, #tpu.memory_space<vmem>>, vector<8x128xf32>
    tpu.vector_store %arg14[%c0_47, %c0_48], %101 {strides = array<i32>} : memref<8x128xf32, #tpu.memory_space<vmem>>, vector<8x128xf32>,
    return
  }
  func.func @transform_0(%arg0: i32) -> (i32, i32) {
    %c0_i32 = arith.constant 0 : i32
    %c0_i32_0 = arith.constant 0 : i32
    return %arg0, %c0_i32 : i32, i32
  }
  func.func @transform_1(%arg0: i32) -> (i32, i32) {
    %c0_i32 = arith.constant 0 : i32
    %c0_i32_0 = arith.constant 0 : i32
    %c0_i32_1 = arith.constant 0 : i32
    return %c0_i32, %c0_i32_0 : i32, i32
  }
  func.func @transform_2(%arg0: i32) -> (i32, i32) {
    %c0_i32 = arith.constant 0 : i32
    %c0_i32_0 = arith.constant 0 : i32
    %c0_i32_1 = arith.constant 0 : i32
    return %c0_i32, %c0_i32_0 : i32, i32
  }
  func.func @transform_3(%arg0: i32) -> (i32, i32) {
    %c0_i32 = arith.constant 0 : i32
    %c0_i32_0 = arith.constant 0 : i32
    %c0_i32_1 = arith.constant 0 : i32
    return %c0_i32, %c0_i32_0 : i32, i32
  }
  func.func @transform_4(%arg0: i32) -> (i32, i32) {
    %c0_i32 = arith.constant 0 : i32
    %c0_i32_0 = arith.constant 0 : i32
    %c0_i32_1 = arith.constant 0 : i32
    return %c0_i32, %c0_i32_0 : i32, i32
  }
  func.func @transform_5(%arg0: i32) -> (i32, i32) {
    %c0_i32 = arith.constant 0 : i32
    %c0_i32_0 = arith.constant 0 : i32
    %c0_i32_1 = arith.constant 0 : i32
    return %c0_i32, %c0_i32_0 : i32, i32
  }
  func.func @transform_6(%arg0: i32) -> (i32, i32) {
    %c0_i32 = arith.constant 0 : i32
    %c0_i32_0 = arith.constant 0 : i32
    %c0_i32_1 = arith.constant 0 : i32
    return %c0_i32, %c0_i32_0 : i32, i32
  }
  func.func @transform_7(%arg0: i32) -> (i32, i32) {
    %c0_i32 = arith.constant 0 : i32
    %c0_i32_0 = arith.constant 0 : i32
    %c0_i32_1 = arith.constant 0 : i32
    return %c0_i32, %c0_i32_0 : i32, i32
  }
  func.func @transform_8(%arg0: i32) -> (i32, i32) {
    %c0_i32 = arith.constant 0 : i32
    %c0_i32_0 = arith.constant 0 : i32
    %c0_i32_1 = arith.constant 0 : i32
    return %c0_i32, %c0_i32_0 : i32, i32
  }
  func.func @transform_9(%arg0: i32) -> (i32, i32) {
    %c0_i32 = arith.constant 0 : i32
    %c0_i32_0 = arith.constant 0 : i32
    %c0_i32_1 = arith.constant 0 : i32
    return %c0_i32, %c0_i32_0 : i32, i32
  }
  func.func @transform_10(%arg0: i32) -> (i32, i32) {
    %c0_i32 = arith.constant 0 : i32
    %c0_i32_0 = arith.constant 0 : i32
    %c0_i32_1 = arith.constant 0 : i32
    return %c0_i32, %c0_i32_0 : i32, i32
  }
  func.func @transform_11(%arg0: i32) -> (i32, i32) {
    %c0_i32 = arith.constant 0 : i32
    %c0_i32_0 = arith.constant 0 : i32
    %c0_i32_1 = arith.constant 0 : i32
    return %c0_i32, %c0_i32_0 : i32, i32
  }
  func.func @transform_12(%arg0: i32) -> (i32, i32) {
    %c0_i32 = arith.constant 0 : i32
    %c0_i32_0 = arith.constant 0 : i32
    %c0_i32_1 = arith.constant 0 : i32
    return %c0_i32, %c0_i32_0 : i32, i32
  }
  func.func @transform_13(%arg0: i32) -> (i32, i32) {
    %c0_i32 = arith.constant 0 : i32
    %c0_i32_0 = arith.constant 0 : i32
    return %arg0, %c0_i32 : i32, i32
  }
}

</mosaic_0001>

<bundles_post_ra>
// kernel: tpu_custom_call.1
= control target key start
LH: loop header
LB: loop body
LE: loop exit
PB: predicated region body
PF: predicated region fallthrough
CT: control target
= control target key end

     0   :  { %18 = vsyncpa [#allocation3], 0  ;;  %s909_s0 = inlined_call_operand.hbm [shape: bf16[8,128], index: 0, kind: input, shape index: {}]   ;;  %s910_s1 = inlined_call_operand.hbm [shape: f32[1,128], index: 1, kind: input, shape index: {}]   ;;  %s911_s2 = inlined_call_operand.vmem [shape: f32[1,128], index: 2, kind: input, shape index: {}]   ;;  %s912_s3 = inlined_call_operand.hbm [shape: bf16[128,128], index: 3, kind: input, shape index: {}]   ;;  %s913_s4 = inlined_call_operand.vmem [shape: f32[1,128], index: 4, kind: input, shape index: {}]   ;;  %s914_s5 = inlined_call_operand.vmem [shape: f32[1,128], index: 5, kind: input, shape index: {}]   ;;  %s915_s6 = inlined_call_operand.vmem [shape: f32[1,128], index: 6, kind: input, shape index: {}]   ;;  %s916_s7 = inlined_call_operand.hbm [shape: bf16[128,128], index: 7, kind: input, shape index: {}]   ;;  %s917_s8 = inlined_call_operand.vmem [shape: f32[1,128], index: 8, kind: input, shape index: {}]   ;;  %s918_s9 = inlined_call_operand.hbm [shape: bf16[128,128], index: 9, kind: input, shape index: {}]   ;;  %s919_s10 = inlined_call_operand.vmem [shape: f32[1,128], index: 10, kind: input, shape index: {}]   ;;  %s920_s11 = inlined_call_operand.vmem [shape: f32[1,128], index: 11, kind: input, shape index: {}]   ;;  %s921_s12 = inlined_call_operand.vmem [shape: f32[1,128], index: 12, kind: input, shape index: {}]   ;;  %s922_s13 = inlined_call_operand.hbm [shape: f32[8,128], index: 13, kind: output, shape index: {}]  }
   0x1   :  { %19 = vsyncpa [#allocation6], 0 }
   0x2   :  { %20 = vsyncpa [#allocation9], 0  ;;  %s38_s27 = sshll.u32 %s910_s1, 4  ;;  %s39_s27 = int_to_ptr.hbm [resolvable:$true] %s38_s27 }
   0x3   :  { %21 = vsyncpa [#allocation4], 0  ;;  %s783_s28 = smov [#allocation5]   ;;  %s69_s15 = sshll.u32 %s916_s7, 4  ;;  %s70_s15 = int_to_ptr.hbm [resolvable:$true] %s69_s15 }
   0x4   :  { %s40_s29 = sshll.u32 %s783_s28, 4  ;;  %s784_s16 = smov [#allocation8]   ;;  %s41_s29 = int_to_ptr.vmem [resolvable:$true] %s40_s29 }
   0x5   :  { %43 = dma.hbm_to_vmem [thread:$0]  %s39_s27, 16, %s41_s29, [#allocation6]  }
   0x6   :  { %s71_s17 = sshll.u32 %s784_s16, 4  ;;  %s27_s20 = sshll.u32 %s909_s0, 4  ;;  %s72_s17 = int_to_ptr.vmem [resolvable:$true] %s71_s17  ;;  %s28_s20 = int_to_ptr.hbm [resolvable:$true] %s27_s20 }
   0x7   :  { %s785_s1 = smov 64   ;;  %s786_s21 = smov 4  }
   0x8   :  { %77 = dma.hbm_to_vmem [thread:$0]  %s70_s15, 1024, %s72_s17, [#allocation9], %s785_s1, %s785_s1, %s786_s21  }
   0x9   :  { %s50_s24 = sshll.u32 %s912_s3, 4  ;;  %s787_s25 = smov [#allocation2]   ;;  %s51_s24 = int_to_ptr.hbm [resolvable:$true] %s50_s24 }
   0xa   :  { %s29_s26 = sshll.u32 %s787_s25, 4  ;;  %s788_s7 = smov [#allocation7]   ;;  %s30_s26 = int_to_ptr.vmem [resolvable:$true] %s29_s26 }
   0xb   :  { %32 = dma.hbm_to_vmem [thread:$0]  %s28_s20, 64, %s30_s26, [#allocation3]  }
   0xc   :  { %s52_s27 = sshll.u32 %s788_s7, 4  ;;  %s84_s0 = sshll.u32 %s918_s9, 4  ;;  %s53_s27 = int_to_ptr.vmem [resolvable:$true] %s52_s27  ;;  %s85_s0 = int_to_ptr.hbm [resolvable:$true] %s84_s0 }
   0xd   :  { %58 = dma.hbm_to_vmem [thread:$0]  %s51_s24, 1024, %s53_s27, [#allocation6], %s785_s1, %s785_s1, %s786_s21  }
   0xe   :  { %s789_s30 = smov [#allocation10]  }
   0xf   :  { %s86_s14 = sshll.u32 %s789_s30, 4  ;;  %s87_s14 = int_to_ptr.vmem [resolvable:$true] %s86_s14 }
  0x10   :  { %92 = dma.hbm_to_vmem [thread:$0]  %s85_s0, 1024, %s87_s14, [#allocation9], %s785_s1, %s785_s1, %s786_s21  }
  0x11   :  { %775 = dma.done.wait [#allocation3], 64  }
  0x12   :  { %776 = vsyncadd [#allocation3], 4294967232 }
  0x13   :  { %777 = dma.done.wait [#allocation6], 1040  }
  0x14   :  { %778 = vsyncadd [#allocation6], 4294966256 }
  0x15   :  { %779 = dma.done.wait [#allocation9], 2048  }
  0x16   :  { %780 = vsyncadd [#allocation9], 4294965248  ;;  %v119_v0 = vld [vmem:[#allocation2] sm:$0xf]  ;;  %v606_v2 = vld [vmem:[#allocation10 + $0x30] sm:$0xff]  ;;  %s790_s23 = smov [#allocation11]  }
  0x17   :  { %v607_v1 = vld [vmem:[#allocation10 + $0x38] sm:$0xff]  ;;  %v120_v3 = vunpack.c.l.bf16 %v119_v0  ;;  %v605_v5 = vld [vmem:[#allocation10 + $0x28] sm:$0xff]  ;;  %v604_v6 = vld [vmem:[#allocation10 + $0x20] sm:$0xff]  ;;  %s474_s24 = sshll.u32 %s790_s23, 4  ;;  %s476_s7 = sshll.u32 %s922_s13, 4  ;;  %s475_s24 = int_to_ptr.vmem [resolvable:$true] %s474_s24  ;;  %s477_s7 = int_to_ptr.hbm [resolvable:$true] %s476_s7 }
  0x18   :  { %421 = vmatpush.bf16.msra.mxu2 %v607_v1  ;;  %v603_v7 = vld [vmem:[#allocation10 + $0x18] sm:$0xff]  ;;  %v602_v9 = vld [vmem:[#allocation10 + $0x10] sm:$0xff]  ;;  %v601_v11 = vld [vmem:[#allocation10 + $0x8] sm:$0xff] }
  0x19   :  { %123 = vadd.xlane.f32.xlu0 %v120_v3  ;;  %v126_v4 = vmul.f32 %v120_v3, %v120_v3  ;;  %v591_v8 = vld [vmem:[#allocation7 + $0x38] sm:$0xff]  ;;  %v590_v10 = vld [vmem:[#allocation7 + $0x30] sm:$0xff]  ;;  %v589_v12 = vld [vmem:[#allocation7 + $0x28] sm:$0xff] }
  0x1a   :  { %224 = vmatpush.bf16.msra.mxu0 %v591_v8  ;;  %v600_v13 = vld [vmem:[#allocation10] sm:$0xff]  ;;  %v587_v15 = vld [vmem:[#allocation7 + $0x18] sm:$0xff]  ;;  %v586_v16 = vld [vmem:[#allocation7 + $0x10] sm:$0xff] }
  0x1b   :  { %v588_v14 = vld [vmem:[#allocation7 + $0x20] sm:$0xff]  ;;  %v585_v18 = vld [vmem:[#allocation7 + $0x8] sm:$0xff]  ;;  %v616_v34 = vld [vmem:[#allocation5] ss:$0 sm:$0xff] }
  0x1c   :  { %422 = vmatpush.bf16.msra.mxu2 %v606_v2  ;;  %v584_v20 = vld [vmem:[#allocation7] sm:$0xff]  ;;  %v617_v37 = vld [vmem:[%s911_s2] ss:$0 sm:$0xff]  ;;  %v598_v53 = vld [vmem:[#allocation8 + $0x30] sm:$0xff] }
  0x1d   :  { %v618_v42 = vld [vmem:[%s919_s10] ss:$0 sm:$0xff]  ;;  %v597_v54 = vld [vmem:[#allocation8 + $0x28] sm:$0xff]  ;;  %v596_v55 = vld [vmem:[#allocation8 + $0x20] sm:$0xff] }
  0x1e   :  { %225 = vmatpush.bf16.msra.mxu0 %v590_v10  ;;  %v619_v47 = vld [vmem:[%s913_s4] ss:$0 sm:$0xff]  ;;  %v594_v57 = vld [vmem:[#allocation8 + $0x10] sm:$0xff]  ;;  %v593_v59 = vld [vmem:[#allocation8 + $0x8] sm:$0xff] }
  0x1f   :  { %v599_v52 = vld [vmem:[#allocation8 + $0x38] sm:$0xff]  ;;  %v592_v61 = vld [vmem:[#allocation8] sm:$0xff] }
  0x20   :  { %423 = vmatpush.bf16.msra.mxu2 %v605_v5  ;;  %340 = vmatpush.bf16.msra.mxu1 %v599_v52  ;;  %v595_v56 = vld [vmem:[#allocation8 + $0x18] sm:$0xff] }
  0x21   :  { %127 = vadd.xlane.f32.xlu0 %v126_v4 }
  0x22   :  { %226 = vmatpush.bf16.msra.mxu0 %v589_v12 }
  0x24   :  { %424 = vmatpush.bf16.msra.mxu2 %v604_v6  ;;  %341 = vmatpush.bf16.msra.mxu1 %v598_v53 }
  0x26   :  { %227 = vmatpush.bf16.msra.mxu0 %v588_v14  ;;  %v621_v14 = vld [vmem:[%s915_s6] ss:$0 sm:$0xff] }
  0x28   :  { %425 = vmatpush.bf16.msra.mxu2 %v603_v7  ;;  %342 = vmatpush.bf16.msra.mxu1 %v597_v54 }
  0x2a   :  { %228 = vmatpush.bf16.msra.mxu0 %v587_v15 }
  0x2c   :  { %426 = vmatpush.bf16.msra.mxu2 %v602_v9  ;;  %343 = vmatpush.bf16.msra.mxu1 %v596_v55 }
  0x2e   :  { %229 = vmatpush.bf16.msra.mxu0 %v586_v16 }
  0x30   :  { %427 = vmatpush.bf16.msra.mxu2 %v601_v11  ;;  %344 = vmatpush.bf16.msra.mxu1 %v595_v56  ;;  %v620_v11 = vld [vmem:[%s914_s5] ss:$0 sm:$0xff] }
  0x32   :  { %230 = vmatpush.bf16.msra.mxu0 %v585_v18 }
  0x34   :  { %428 = vmatpush.bf16.msra.mxu2 %v600_v13  ;;  %345 = vmatpush.bf16.msra.mxu1 %v594_v57 }
  0x36   :  { %231 = vmatpush.bf16.msra.mxu0 %v584_v20 }
  0x37   :  { %429 = vmatmul.bf16.vlgmr.msra.gmra.mxu2 %v119_v0 }
  0x38   :  { %346 = vmatpush.bf16.msra.mxu1 %v593_v59 }
  0x3c   :  { %347 = vmatpush.bf16.msra.mxu1 %v592_v61 }
  0x8c   :  { %v124_v17 = vpop.xlane.xlu0 %123 }
  0x8d   :  { %v125_v19 = vmul.f32 0.03125, %v124_v17 }
  0x8f   :  { %v130_v22 = vmul.f32 %v125_v19, %v125_v19  ;;  %v133_v33 = vsub.f32 %v120_v3, %v125_v19 }
  0x94   :  { %v128_v21 = vpop.xlane.xlu0 %127 }
  0x95   :  { %v129_v23 = vmul.f32 0.03125, %v128_v21 }
  0x97   :  { %v131_v24 = vsub.f32 %v129_v23, %v130_v22 }
  0x99   :  { %v132_v25 = vmax.f32 %v131_v24, 0.0 }
  0x9b   :  { %v134_v26 = vadd.f32 1e-05, %v132_v25 }
  0x9d   :  { %625 = vrsqrt.f32 %v134_v26  ;;  %vm141_vm1 = vweird.f32 %v134_v26 }
  0xa3   :  { %v626_v27 = vpop.eup %625 }
  0xa4   :  { %v136_v28 = vmul.f32 %v626_v27, %v134_v26  ;;  %vm142_vm0 = vweird.f32 %v626_v27 }
  0xa5   :  { %vm143_vm2 = vmor %vm141_vm1, %vm142_vm0 }
  0xa6   :  { %v137_v29 = vmul.f32 %v626_v27, %v136_v28 }
  0xa8   :  { %v138_v30 = vmul.f32 0.5, %v137_v29 }
  0xaa   :  { %v139_v31 = vsub.f32 1.5, %v138_v30 }
  0xac   :  { %v140_v32 = vmul.f32 %v626_v27, %v139_v31 }
  0xae   :  { %v144_v35 = vsel %vm143_vm2, %v626_v27, %v140_v32 }
  0xaf   :  { %v145_v36 = vmul.f32 %v144_v35, %v133_v33 }
  0xb1   :  { %v149_v38 = vmul.f32 %v616_v34, %v145_v36  ;;  %v623_v36 = vld [vmem:[%s920_s11] ss:$0 sm:$0xff] }
  0xb3   :  { %v153_v39 = vadd.f32 %v617_v37, %v149_v38  ;;  %v622_v37 = vld [vmem:[%s917_s8] ss:$0 sm:$0xff] }
  0xb5   :  { %v154_v40 = vmax.f32 %v153_v39, 0.0  ;;  %v624_v39 = vld [vmem:[%s921_s12] ss:$0 sm:$0xff] }
  0xb7   :  { %v155_v41 = vpack.c.bf16 %v154_v40, %v154_v40 }
  0xb9   :  { %232 = vmatmul.bf16.vlgmr.msra.gmra.mxu0 %v155_v41 }
  0xba   :  { %v430_v43 = vpop.f32.mrf.mxu2 }
  0xbb   :  { %v882_v44 = vadd.f32 %v618_v42, %v430_v43 }
  0xbd   :  { %436 = vadd.xlane.f32.xlu2 %v882_v44  ;;  %v439_v45 = vmul.f32 %v882_v44, %v882_v44 }
  0xc2   :  { %v432_v46 = vpop.f32.mrf.mxu2 }
  0xc5   :  { %440 = vadd.xlane.f32.xlu2 %v439_v45 }
 0x130   :  { %v437_v19 = vpop.xlane.xlu2 %436 }
 0x131   :  { %v438_v20 = vmul.f32 0.015625, %v437_v19 }
 0x133   :  { %v443_v22 = vmul.f32 %v438_v20, %v438_v20  ;;  %v446_v33 = vsub.f32 %v882_v44, %v438_v20 }
 0x136   :  { %v233_v48 = vpop.f32.mrf.mxu0 }
 0x137   :  { %v234_v49 = vadd.f32 %v619_v47, %v233_v48 }
 0x138   :  { %v441_v21 = vpop.xlane.xlu2 %440 }
 0x139   :  { %239 = vadd.xlane.f32.xlu1 %v234_v49  ;;  %v242_v51 = vmul.f32 %v234_v49, %v234_v49  ;;  %v442_v23 = vmul.f32 0.015625, %v441_v21 }
 0x13b   :  { %v444_v24 = vsub.f32 %v442_v23, %v443_v22 }
 0x13d   :  { %v445_v25 = vmax.f32 %v444_v24, 0.0 }
 0x13e   :  { %v235_v50 = vpop.f32.mrf.mxu0 }
 0x13f   :  { %v447_v26 = vadd.f32 1e-05, %v445_v25 }
 0x141   :  { %243 = vadd.xlane.f32.xlu1 %v242_v51  ;;  %vm454_vm6 = vweird.f32 %v447_v26 }
 0x1ac   :  { %v240_v58 = vpop.xlane.xlu1 %239 }
 0x1ad   :  { %v241_v60 = vmul.f32 0.015625, %v240_v58 }
 0x1af   :  { %v246_v63 = vmul.f32 %v241_v60, %v241_v60  ;;  %v249_v10 = vsub.f32 %v234_v49, %v241_v60 }
 0x1b4   :  { %v244_v62 = vpop.xlane.xlu1 %243 }
 0x1b5   :  { %v245_v0 = vmul.f32 0.015625, %v244_v62 }
 0x1b7   :  { %v247_v1 = vsub.f32 %v245_v0, %v246_v63 }
 0x1b9   :  { %v248_v2 = vmax.f32 %v247_v1, 0.0 }
 0x1bb   :  { %v250_v3 = vadd.f32 1e-05, %v248_v2 }
 0x1bd   :  { %627 = vrsqrt.f32 %v250_v3  ;;  %vm257_vm4 = vweird.f32 %v250_v3 }
 0x1be   :  { %629 = vrsqrt.f32 %v447_v26 }
 0x1c3   :  { %v628_v4 = vpop.eup %627 }
 0x1c4   :  { %v252_v5 = vmul.f32 %v628_v4, %v250_v3  ;;  %vm258_vm3 = vweird.f32 %v628_v4  ;;  %v630_v27 = vpop.eup %629 }
 0x1c5   :  { %vm259_vm5 = vmor %vm257_vm4, %vm258_vm3  ;;  %v449_v28 = vmul.f32 %v630_v27, %v447_v26  ;;  %vm455_vm7 = vweird.f32 %v630_v27 }
 0x1c6   :  { %v253_v6 = vmul.f32 %v628_v4, %v252_v5  ;;  %vm456_vm8 = vmor %vm454_vm6, %vm455_vm7 }
 0x1c7   :  { %v450_v29 = vmul.f32 %v630_v27, %v449_v28 }
 0x1c8   :  { %v254_v7 = vmul.f32 0.5, %v253_v6 }
 0x1c9   :  { %v451_v30 = vmul.f32 0.5, %v450_v29 }
 0x1ca   :  { %v255_v8 = vsub.f32 1.5, %v254_v7 }
 0x1cb   :  { %v452_v31 = vsub.f32 1.5, %v451_v30 }
 0x1cc   :  { %v256_v9 = vmul.f32 %v628_v4, %v255_v8 }
 0x1cd   :  { %v453_v32 = vmul.f32 %v630_v27, %v452_v31 }
 0x1ce   :  { %v260_v12 = vsel %vm259_vm5, %v628_v4, %v256_v9 }
 0x1cf   :  { %v261_v13 = vmul.f32 %v260_v12, %v249_v10  ;;  %v457_v34 = vsel %vm456_vm8, %v630_v27, %v453_v32 }
 0x1d0   :  { %v458_v35 = vmul.f32 %v457_v34, %v446_v33 }
 0x1d1   :  { %v265_v15 = vmul.f32 %v620_v11, %v261_v13 }
 0x1d2   :  { %v462_v38 = vmul.f32 %v623_v36, %v458_v35 }
 0x1d3   :  { %v269_v16 = vadd.f32 %v621_v14, %v265_v15 }
 0x1d4   :  { %v466_v42 = vadd.f32 %v624_v39, %v462_v38 }
 0x1d5   :  { %v270_v17 = vmax.f32 %v269_v16, 0.0 }
 0x1d7   :  { %v271_v18 = vpack.c.bf16 %v270_v17, %v270_v17 }
 0x1d9   :  { %348 = vmatmul.bf16.vlgmr.msra.gmra.mxu1 %v271_v18 }
 0x256   :  { %v349_v40 = vpop.f32.mrf.mxu1 }
 0x257   :  { %v350_v41 = vadd.f32 %v622_v37, %v349_v40 }
 0x259   :  { %v467_v43 = vadd.f32 %v466_v42, %v350_v41 }
 0x25b   :  { %468 = vst [vmem:[#allocation11] sm:$0xff] %v467_v43 }
 0x25c   :  { %479 = dma.vmem_to_hbm [thread:$0]  %s475_s24, 128, %s477_s7, [#allocation4]  }
 0x25e   :  { %v351_v44 = vpop.f32.mrf.mxu1 }
 0x25f   :  { %781 = dma.done.wait [#allocation4], 128  }
 0x260   :  { %782 = vsyncadd [#allocation4], 4294967168 }
 0x261   :  { %484 = vsyncpa [#allocation3], 1 }
 0x262   :  { %485 = vsyncpa [#allocation6], 1 }
 0x263   :  { %486 = vsyncpa [#allocation9], 1 }
 0x264   :  { %487 = vsyncpa [#allocation4], 1 }

</bundles_post_ra>
